<compile_context>
chip_gen: v7x
topology: tpu7x:2x2x1
jax: 0.10.0
libtpu: 0.0.40
codegen_flags: <defaults>
</compile_context>

<pallas_src>
import functools

import jax
import jax.numpy as jnp
from jax.experimental import pallas as pl
from jax.experimental.pallas import tpu as pltpu

_PAD_ROWS = 8  # sublane-aligned zero-pad region on each side of the pooled channel vector


def _vmem_budget():
    """Returns (vmem_limit_bytes, per-block byte budget in f32-equivalent bytes)."""
    try:
        cap = int(getattr(pltpu.get_tpu_info(), "vmem_capacity_bytes", 64 * 1024 * 1024))
    except Exception:
        cap = 64 * 1024 * 1024
    # ~96 MiB scoped limit on v5e/v6e (128 MiB physical), ~48 MiB on v7x (64 MiB physical).
    limit = min(cap * 3 // 4, 96 * 1024 * 1024)
    # in + out double-buffered (~4x block) + in-kernel f32 temporaries -> keep ~10x headroom.
    return limit, limit // 10


@functools.lru_cache(maxsize=None)
def _eca_call(N, C, HW, k, dtype_name):
    """Fused ECA: global-avg-pool -> k-tap channel Conv1d -> sigmoid -> scale."""
    dtype = jnp.dtype(dtype_name)
    assert C % 8 == 0, "eca kernel expects channel count to be a multiple of 8 (module uses 64)"
    assert k % 2 == 1 and (k - 1) // 2 <= _PAD_ROWS, "unsupported Conv1d kernel size"
    pad = (k - 1) // 2
    inv_hw = 1.0 / float(HW)

    vmem_limit, block_budget = _vmem_budget()
    per_batch_f32 = C * HW * 4                                  # budget in f32-equivalent bytes
    nb = int(max(1, min(N, block_budget // max(per_batch_f32, 1))))
    grid = (pl.cdiv(N, nb),)

    def kernel(x_ref, w_ref, o_ref, pool_ref):
        xf = x_ref[...].astype(jnp.float32)                     # (nb, C, HW), f32 compute
        # Global average pool: XLU cross-lane reduce (free filler in an HBM-bound kernel).
        p = jnp.sum(xf, axis=-1, keepdims=True) * inv_hw        # (nb, C, 1)

        # k-tap Conv1d over the channel (sublane) axis with zero padding, via statically
        # shifted reads of a padded scratch.  Boundary taps are masked (never arithmetic on
        # the uninitialized pad rows).
        pool_ref[:, pl.ds(_PAD_ROWS, C), :] = p                 # aligned sublane store
        cidx = jax.lax.broadcasted_iota(jnp.int32, (nb, C, 1), 1)
        y = w_ref[pad] * p                                      # center tap (SMEM scalar)
        for d in range(1, pad + 1):
            p_lo = pool_ref[:, pl.ds(_PAD_ROWS - d, C), :]      # p[c - d]
            p_hi = pool_ref[:, pl.ds(_PAD_ROWS + d, C), :]      # p[c + d]
            y = y + w_ref[pad - d] * jnp.where(cidx >= d, p_lo, 0.0)
            y = y + w_ref[pad + d] * jnp.where(cidx < C - d, p_hi, 0.0)

        scale = jax.nn.sigmoid(y)                               # (nb, C, 1) f32
        o_ref[...] = (xf * scale).astype(o_ref.dtype)           # broadcast over H*W lanes

    call = pl.pallas_call(
        kernel,
        out_shape=jax.ShapeDtypeStruct((N, C, HW), dtype),
        grid=grid,
        in_specs=[
            pl.BlockSpec((nb, C, HW), lambda n: (n, 0, 0)),           # multi-batch block
            pl.BlockSpec(memory_space=pltpu.MemorySpace.SMEM),        # (k,) conv taps
        ],
        out_specs=pl.BlockSpec((nb, C, HW), lambda n: (n, 0, 0)),
        scratch_shapes=[pltpu.VMEM((nb, C + 2 * _PAD_ROWS, 1), jnp.float32)],
        input_output_aliases={0: 0},                                  # out reuses x's HBM buffer
        compiler_params=pltpu.CompilerParams(
            dimension_semantics=("parallel",),
            vmem_limit_bytes=vmem_limit,
        ),
    )
    return jax.jit(call)


def eca_forward(x, conv_w):
    """ECA layer forward.

    x:       (N, C, H, W) float32 or bfloat16 (NCHW, matching the PyTorch module)
    conv_w:  (k,) float32  -- PyTorch Conv1d weight, weight[0, 0, :]
    returns  (N, C, H, W) in x.dtype
    """
    N, C, H, W = x.shape
    conv_w = jnp.asarray(conv_w, jnp.float32).reshape(-1)
    k = int(conv_w.shape[0])
    x_flat = x.reshape(N, C, H * W)                 # contiguous reshape, no data movement
    out = _eca_call(N, C, H * W, k, jnp.dtype(x.dtype).name)(x_flat, conv_w)
    return out.reshape(N, C, H, W)


if __name__ == "__main__":
    # The module hard-codes channel = 64; small spatial size for the smoke test.
    N, C, H, W = 2, 64, 16, 16
    K_SIZE = 3

    key = jax.random.PRNGKey(0)
    kx, kw = jax.random.split(key)
    x = jax.random.uniform(kx, (N, C, H, W), jnp.float32)
    conv_w = 0.3 * jax.random.normal(kw, (K_SIZE,), jnp.float32)

    def ref_fn(xr):
        xr32 = xr.astype(jnp.float32)
        pool = jnp.mean(xr32, axis=(2, 3))                              # (N, C)
        pool_p = jnp.pad(pool, ((0, 0), (1, 1)))
        y = (conv_w[0] * pool_p[:, :-2] + conv_w[1] * pool_p[:, 1:-1]
             + conv_w[2] * pool_p[:, 2:])
        return xr32 * jax.nn.sigmoid(y)[:, :, None, None]

    # float32 path
    out = jax.block_until_ready(eca_forward(x, conv_w))
    ref = ref_fn(x)
    assert out.shape == (N, C, H, W), out.shape
    assert bool(jnp.all(jnp.isfinite(out)))
    max_err = float(jnp.max(jnp.abs(out - ref)))
    assert bool(jnp.allclose(out, ref, atol=1e-5, rtol=1e-5)), max_err

    # bfloat16 I/O path (halves HBM traffic; compute stays f32 in-kernel)
    xb = x.astype(jnp.bfloat16)
    out_b = jax.block_until_ready(eca_forward(xb, conv_w))
    assert out_b.dtype == jnp.bfloat16
    ref_b = ref_fn(xb)
    assert bool(jnp.allclose(out_b.astype(jnp.float32), ref_b, atol=1e-2, rtol=1e-2))

    print("KERNEL_OK")
</pallas_src>

<mosaic_0001>
module attributes {stable_mosaic.version = 11 : i64} {
  func.func @kernel(%arg0: i32, %arg1: memref<2x64x256xf32, #tpu.memory_space<vmem>>, %arg2: memref<3xf32, #tpu.memory_space<smem>>, %arg3: memref<2x64x256xf32, #tpu.memory_space<vmem>>, %arg4: memref<2x80x1xf32, #tpu.memory_space<vmem>>) attributes {dimension_semantics = [#tpu.dimension_semantics<parallel>], iteration_bounds = array<i64: 1>, scalar_prefetch = 0 : i64, scratch_operands = 1 : i64, tpu.core_type = #tpu.core_type<tc>, window_params = [{transform_indices = @transform_0, window_bounds = array<i64: 2, 64, 256>}, {transform_indices = @transform_1, window_bounds = array<i64: 3>}, {transform_indices = @transform_2, window_bounds = array<i64: 2, 64, 256>}]} {
    %c0 = arith.constant 0 : index
    %c0_0 = arith.constant 0 : index
    %c0_1 = arith.constant 0 : index
    %0 = vector.load %arg1[%c0, %c0_0, %c0_1] : memref<2x64x256xf32, #tpu.memory_space<vmem>>, vector<2x64x256xf32>
    %cst = arith.constant dense<0.000000e+00> : vector<2x64xf32>
    %1 = vector.multi_reduction <add>, %0, %cst [2] : vector<2x64x256xf32> to vector<2x64xf32>
    %2 = vector.shape_cast %1 : vector<2x64xf32> to vector<2x64x1xf32>
    %cst_2 = arith.constant 3.906250e-03 : f32
    %3 = vector.broadcast %cst_2 : f32 to vector<2x64x1xf32>
    %4 = arith.mulf %2, %3 : vector<2x64x1xf32>
    %c0_3 = arith.constant 0 : index
    %c8 = arith.constant 8 : index
    %c0_4 = arith.constant 0 : index
    %5 = vector.load %arg4[%c0_3, %c8, %c0_4] : memref<2x80x1xf32, #tpu.memory_space<vmem>>, vector<2x64x1xf32>
    tpu.vector_store %arg4[%c0_3, %c8, %c0_4], %4 {strides = array<i32>} : memref<2x80x1xf32, #tpu.memory_space<vmem>>, vector<2x64x1xf32>,
    %6 = tpu.iota {dimensions = array<i32: 1>} : vector<2x64x1xi32>
    %c1 = arith.constant 1 : index
    %7 = memref.load %arg2[%c1] : memref<3xf32, #tpu.memory_space<smem>>
    %8 = vector.broadcast %7 : f32 to vector<2x64x1xf32>
    %9 = arith.mulf %8, %4 : vector<2x64x1xf32>
    %c0_5 = arith.constant 0 : index
    %c7 = arith.constant 7 : index
    %c0_6 = arith.constant 0 : index
    %10 = vector.load %arg4[%c0_5, %c7, %c0_6] : memref<2x80x1xf32, #tpu.memory_space<vmem>>, vector<2x64x1xf32>
    %c0_7 = arith.constant 0 : index
    %c9 = arith.constant 9 : index
    %c0_8 = arith.constant 0 : index
    %11 = vector.load %arg4[%c0_7, %c9, %c0_8] : memref<2x80x1xf32, #tpu.memory_space<vmem>>, vector<2x64x1xf32>
    %c0_9 = arith.constant 0 : index
    %12 = memref.load %arg2[%c0_9] : memref<3xf32, #tpu.memory_space<smem>>
    %c1_i32 = arith.constant 1 : i32
    %13 = vector.broadcast %c1_i32 : i32 to vector<2x64x1xi32>
    %14 = arith.cmpi sge, %6, %13 : vector<2x64x1xi32>
    %cst_10 = arith.constant 0.000000e+00 : f32
    %15 = vector.broadcast %cst_10 : f32 to vector<2x64x1xf32>
    %16 = arith.select %14, %10, %15 : vector<2x64x1xi1>, vector<2x64x1xf32>
    %17 = vector.broadcast %12 : f32 to vector<2x64x1xf32>
    %18 = arith.mulf %17, %16 : vector<2x64x1xf32>
    %19 = arith.addf %9, %18 : vector<2x64x1xf32>
    %c2 = arith.constant 2 : index
    %20 = memref.load %arg2[%c2] : memref<3xf32, #tpu.memory_space<smem>>
    %c63_i32 = arith.constant 63 : i32
    %21 = vector.broadcast %c63_i32 : i32 to vector<2x64x1xi32>
    %22 = arith.cmpi slt, %6, %21 : vector<2x64x1xi32>
    %cst_11 = arith.constant 0.000000e+00 : f32
    %23 = vector.broadcast %cst_11 : f32 to vector<2x64x1xf32>
    %24 = arith.select %22, %11, %23 : vector<2x64x1xi1>, vector<2x64x1xf32>
    %25 = vector.broadcast %20 : f32 to vector<2x64x1xf32>
    %26 = arith.mulf %25, %24 : vector<2x64x1xf32>
    %27 = arith.addf %19, %26 : vector<2x64x1xf32>
    %28 = arith.negf %27 : vector<2x64x1xf32>
    %29 = math.exp %28 : vector<2x64x1xf32>
    %cst_12 = arith.constant 1.000000e+00 : f32
    %30 = vector.broadcast %cst_12 : f32 to vector<2x64x1xf32>
    %31 = arith.addf %30, %29 : vector<2x64x1xf32>
    %32 = arith.divf %30, %31 : vector<2x64x1xf32>
    %33 = vector.broadcast %32 : vector<2x64x1xf32> to vector<2x64x256xf32>
    %34 = arith.mulf %0, %33 : vector<2x64x256xf32>
    %c0_13 = arith.constant 0 : index
    %c0_14 = arith.constant 0 : index
    %c0_15 = arith.constant 0 : index
    %35 = vector.load %arg3[%c0_13, %c0_14, %c0_15] : memref<2x64x256xf32, #tpu.memory_space<vmem>>, vector<2x64x256xf32>
    tpu.vector_store %arg3[%c0_13, %c0_14, %c0_15], %34 {strides = array<i32>} : memref<2x64x256xf32, #tpu.memory_space<vmem>>, vector<2x64x256xf32>,
    return
  }
  func.func @transform_0(%arg0: i32) -> (i32, i32, i32) {
    %c0_i32 = arith.constant 0 : i32
    %c0_i32_0 = arith.constant 0 : i32
    %c0_i32_1 = arith.constant 0 : i32
    return %arg0, %c0_i32, %c0_i32_0 : i32, i32, i32
  }
  func.func @transform_1(%arg0: i32) -> i32 {
    %c0_i32 = arith.constant 0 : i32
    %c0_i32_0 = arith.constant 0 : i32
    return %c0_i32 : i32
  }
  func.func @transform_2(%arg0: i32) -> (i32, i32, i32) {
    %c0_i32 = arith.constant 0 : i32
    %c0_i32_0 = arith.constant 0 : i32
    %c0_i32_1 = arith.constant 0 : i32
    return %arg0, %c0_i32, %c0_i32_0 : i32, i32, i32
  }
}

</mosaic_0001>

<bundles_post_ra>
// kernel: tpu_custom_call.1
= control target key start
LH: loop header
LB: loop body
LE: loop exit
PB: predicated region body
PF: predicated region fallthrough
CT: control target
= control target key end

     0   :  { %7 = vsyncpa [#allocation4], 0  ;;  %s1014_s0 = inlined_call_operand.hbm [shape: f32[2,64,256], index: 0, kind: input, shape index: {}, may-alias: {0,2}]   ;;  %s1015_s1 = inlined_call_operand.vmem [shape: f32[3], index: 1, kind: input, shape index: {}]   ;;  %s1016_s2 = inlined_call_operand.hbm [shape: f32[2,64,256], index: 2, kind: output, shape index: {}, may-alias: {0,2}]  }
   0x1   :  { %8 = vsyncpa [#allocation6], 0 }
   0x2   :  { %9 = vsyncpa [#allocation5], 0  ;;  %s737_s9 = smov [#allocation3]   ;;  %s28_s13 = sshll.u32 %s1015_s1, 4  ;;  %s29_s13 = int_to_ptr.vmem [resolvable:$true] %s28_s13 }
   0x3   :  { %s15_s10 = sshll.u32 %s737_s9, 4  ;;  %s675_s16 = scalar_lea.hbm %s1014_s0, 4096  ;;  %s16_s10 = int_to_ptr.vmem [resolvable:$true] %s15_s10 }
   0x4   :  { %p676_p0 = scmp.ne.s32.totalorder %s1014_s0, %s675_s16  ;;  %p679_p1 = scmp.lt.u32.totalorder %s675_s16, %s1014_s0 }
   0x6   :  { %p681_p2 = pnand %p679_p1, %p676_p0 }
   0x8   :  { %684 = shalt.err (!%p681_p2)
}
   0x9   :  { %s685_s21 = scalar_lea.vmem %s16_s10, 4096  ;;  %p690_p4 = scmp.lt.s32.totalorder %s16_s10, %s16_s10 }
   0xa   :  { %p686_p3 = scmp.ne.s32.totalorder %s16_s10, %s685_s21  ;;  %p691_p5 = scmp.lt.s32.totalorder %s685_s21, %s685_s21 }
   0xc   :  { %p692_p6 = por %p691_p5, %p690_p4 }
   0xe   :  { %p693_p7 = pnand %p692_p6, %p686_p3 }
  0x10   :  { %696 = shalt.err (!%p693_p7)
}
  0x11   :  { %s738_s1 = smov 256   ;;  %s739_s22 = smov 16  }
  0x12   :  { %21 = dma.hbm_to_vmem [thread:$0]  %s1014_s0, 4096, %s16_s10, [#allocation4], %s738_s1, %s738_s1, %s739_s22  }
  0x13   :  { %s697_s25 = scalar_lea.vmem %s29_s13, 16  ;;  %p702_p9 = scmp.lt.s32.totalorder %s29_s13, %s29_s13 }
  0x14   :  { %p698_p8 = scmp.ne.s32.totalorder %s29_s13, %s697_s25  ;;  %p703_p10 = scmp.lt.s32.totalorder %s697_s25, %s697_s25 }
  0x16   :  { %p704_p11 = por %p703_p10, %p702_p9 }
  0x18   :  { %p705_p12 = pnand %p704_p11, %p698_p8 }
  0x1a   :  { %708 = shalt.err (!%p705_p12)
}
  0x1b   :  { %s740_s26 = smov [#allocation7]  }
  0x1c   :  { %31 = dma.vmem_to_smem %s29_s13, 16, %s740_s26, [#allocation6]  }
  0x1d   :  { %731 = dma.done.wait [#allocation4], 4096  }
  0x1e   :  { %732 = vsyncadd [#allocation4], 4294963200 }
  0x1f   :  { %733 = dma.done.wait [#allocation6], 16  }
  0x20   :  { %734 = vsyncadd [#allocation6], 4294967280 }
  0x21   :  { %38 = sfence }
  0x22   :  { %v776_v0 = vld [vmem:[#allocation3 + $0x10] sm:$0xff]  ;;  %v778_v1 = vld [vmem:[#allocation3 + $0x18] sm:$0xff]  ;;  %v780_v2 = vld [vmem:[#allocation3] sm:$0xff]  ;;  %v741_v48 = vmov 0   ;;  %vm135_vm0 = vcmask 7168   ;;  %s211_s0 = sld [smem:[#allocation7]]  ;;  %v152_v54 = vlaneseq }
  0x23   :  { %v74_v3 = vadd.f32 %v778_v1, %v776_v0  ;;  %v784_v4 = vld [vmem:[#allocation3 + $0x8] sm:$0xff]  ;;  %v786_v5 = vld [vmem:[#allocation3 + $0x20] sm:$0xff]  ;;  %v804_v14 = vld [vmem:[#allocation3 + $0x30] sm:$0xff]  ;;  %609 = vset.pattern.permute.xlu1 %v741_v48  ;;  %610 = vset.pattern.permute.xlu0 %v741_v48  ;;  %s585_s27 = sld [smem:[#allocation7 + $0x1]]  ;;  %s586_s28 = sld [smem:[#allocation7 + $0x2]] }
  0x24   :  { %v788_v6 = vld [vmem:[#allocation3 + $0x28] sm:$0xff]  ;;  %v71_v7 = vadd.f32 %v784_v4, %v780_v2  ;;  %v792_v8 = vld [vmem:[#allocation3 + $0x80] sm:$0xff]  ;;  %v806_v15 = vld [vmem:[#allocation3 + $0x38] sm:$0xff]  ;;  %v153_v59 = vshrl.u32 %v152_v54, 7  ;;  %s742_s29 = smov [#allocation8]  }
  0x25   :  { %1024 = vst [vmem:[#allocation12_spill] sm:$0xff] %v792_v8  ;;  %v794_v9 = vld [vmem:[#allocation3 + $0x88] sm:$0xff]  ;;  %75 = vadd.xlane.f32.xlu1 %v74_v3  ;;  %v77_v10 = vadd.f32 %v788_v6, %v786_v5  ;;  %v800_v12 = vld [vmem:[#allocation3 + $0x40] sm:$0xff]  ;;  %v80_v17 = vadd.f32 %v806_v15, %v804_v14  ;;  %v816_v20 = vld [vmem:[#allocation3 + $0x50] sm:$0xff]  ;;  %s572_s30 = sshll.u32 %s742_s29, 4  ;;  %s573_s30 = int_to_ptr.vmem [resolvable:$true] %s572_s30 }
  0x26   :  { %1025 = vst [vmem:[#allocation13_spill] sm:$0xff] %v794_v9  ;;  %72 = vadd.xlane.f32.xlu0 %v71_v7  ;;  %v95_v11 = vadd.f32 %v794_v9, %v792_v8  ;;  %v802_v13 = vld [vmem:[#allocation3 + $0x48] sm:$0xff]  ;;  %v812_v18 = vld [vmem:[#allocation3 + $0x60] sm:$0xff]  ;;  %v818_v21 = vld [vmem:[#allocation3 + $0x58] sm:$0xff]  ;;  %vm212_vm1 = vcmp.ge.s32.totalorder %v153_v59, 1  ;;  %s709_s3 = scalar_lea.vmem %s573_s30, 4096  ;;  %p714_p0 = scmp.lt.s32.totalorder %s573_s30, %s573_s30 }
  0x27   :  { %v83_v16 = vadd.f32 %v802_v13, %v800_v12  ;;  %v814_v19 = vld [vmem:[#allocation3 + $0x68] sm:$0xff]  ;;  %v86_v23 = vadd.f32 %v818_v21, %v816_v20  ;;  %v824_v24 = vld [vmem:[#allocation3 + $0x90] sm:$0xff]  ;;  %v826_v25 = vld [vmem:[#allocation3 + $0x98] sm:$0xff]  ;;  %p710_p13 = scmp.ne.s32.totalorder %s573_s30, %s709_s3  ;;  %p715_p1 = scmp.lt.s32.totalorder %s709_s3, %s709_s3 }
  0x28   :  { %v89_v22 = vadd.f32 %v814_v19, %v812_v18  ;;  %v828_v26 = vld [vmem:[#allocation3 + $0x70] sm:$0xff]  ;;  %v830_v27 = vld [vmem:[#allocation3 + $0x78] sm:$0xff]  ;;  %v98_v28 = vadd.f32 %v826_v25, %v824_v24  ;;  %v840_v32 = vld [vmem:[#allocation3 + $0xa0] sm:$0xff]  ;;  %v876_v60 = vstv %s211_s0 }
  0x29   :  { %78 = vadd.xlane.f32.xlu1 %v77_v10  ;;  %v92_v29 = vadd.f32 %v830_v27, %v828_v26  ;;  %v836_v30 = vld [vmem:[#allocation3 + $0xb0] sm:$0xff]  ;;  %v838_v31 = vld [vmem:[#allocation3 + $0xb8] sm:$0xff]  ;;  %v842_v33 = vld [vmem:[#allocation3 + $0xa8] sm:$0xff]  ;;  %v878_v3 = vstv %s585_s27  ;;  %p716_p2 = por %p715_p1, %p714_p0 }
  0x2a   :  { %96 = vadd.xlane.f32.xlu0 %v95_v11  ;;  %v104_v34 = vadd.f32 %v838_v31, %v836_v30  ;;  %v101_v35 = vadd.f32 %v842_v33, %v840_v32  ;;  %v848_v36 = vld [vmem:[#allocation3 + $0xd0] sm:$0xff]  ;;  %v850_v37 = vld [vmem:[#allocation3 + $0xd8] sm:$0xff]  ;;  %v852_v38 = vld [vmem:[#allocation3 + $0xc0] sm:$0xff] }
  0x2b   :  { %v854_v39 = vld [vmem:[#allocation3 + $0xc8] sm:$0xff]  ;;  %v110_v40 = vadd.f32 %v850_v37, %v848_v36  ;;  %v860_v42 = vld [vmem:[#allocation3 + $0xf0] sm:$0xff]  ;;  %v862_v43 = vld [vmem:[#allocation3 + $0xf8] sm:$0xff]  ;;  %p717_p3 = pnand %p716_p2, %p710_p13 }
  0x2c   :  { %1026 = vst [vmem:[#allocation14_spill] sm:$0xff] %v854_v39  ;;  %v107_v41 = vadd.f32 %v854_v39, %v852_v38  ;;  %1027 = vst [vmem:[#allocation15_spill] sm:$0xff] %v860_v42  ;;  %v864_v44 = vld [vmem:[#allocation3 + $0xe0] sm:$0xff]  ;;  %v866_v45 = vld [vmem:[#allocation3 + $0xe8] sm:$0xff]  ;;  %v116_v46 = vadd.f32 %v862_v43, %v860_v42 }
  0x2d   :  { %84 = vadd.xlane.f32.xlu1 %v83_v16  ;;  %1028 = vst [vmem:[#allocation16_spill] sm:$0xff] %v862_v43  ;;  %1029 = vst [vmem:[#allocation17_spill] sm:$0xff] %v864_v44  ;;  %v113_v47 = vadd.f32 %v866_v45, %v864_v44 }
  0x2e   :  { %81 = vadd.xlane.f32.xlu0 %v80_v17  ;;  %1030 = vst [vmem:[#allocation18_spill] sm:$0xff] %v866_v45 }
  0x31   :  { %90 = vadd.xlane.f32.xlu1 %v89_v22 }
  0x32   :  { %87 = vadd.xlane.f32.xlu0 %v86_v23 }
  0x35   :  { %99 = vadd.xlane.f32.xlu1 %v98_v28  ;;  %v884_v28 = vstv %s586_s28 }
  0x36   :  { %93 = vadd.xlane.f32.xlu0 %v92_v29 }
  0x39   :  { %105 = vadd.xlane.f32.xlu1 %v104_v34 }
  0x3a   :  { %102 = vadd.xlane.f32.xlu0 %v101_v35  ;;  %v886_v35 = vadd.s32 56, %v153_v59 }
  0x3c   :  { %vm277_vm2 = vcmp.lt.s32.totalorder %v886_v35, 63 }
  0x3d   :  { %111 = vadd.xlane.f32.xlu1 %v110_v40 }
  0x3e   :  { %108 = vadd.xlane.f32.xlu0 %v107_v41 }
  0x41   :  { %117 = vadd.xlane.f32.xlu1 %v116_v46 }
  0x42   :  { %114 = vadd.xlane.f32.xlu0 %v113_v47 }
  0xb2   :  { %v76_v49 = vpop.xlane.xlu1 %75 }
  0xb3   :  { %v120_v50 = vmul.f32 0.00390625, %v76_v49  ;;  %v73_v51 = vpop.xlane.xlu0 %72 }
  0xb4   :  { %v119_v52 = vmul.f32 0.00390625, %v73_v51 }
  0xb5   :  { %137 = vst.msk [vmem:[#allocation2 + $0x10] sm:$0xff] %vm135_vm0, %v120_v50  ;;  %v164_v23 = vmul.f32 %v878_v3, %v120_v50 }
  0xb6   :  { %136 = vst.msk [vmem:[#allocation2 + $0x8] sm:$0xff] %vm135_vm0, %v119_v52  ;;  %v79_v53 = vpop.xlane.xlu1 %78  ;;  %v163_v54 = vmul.f32 %v878_v3, %v119_v52 }
  0xb7   :  { %v121_v55 = vmul.f32 0.00390625, %v79_v53  ;;  %v97_v56 = vpop.xlane.xlu0 %96 }
  0xb8   :  { %v127_v57 = vmul.f32 0.00390625, %v97_v56 }
  0xb9   :  { %138 = vst.msk [vmem:[#allocation2 + $0x18] sm:$0xff] %vm135_vm0, %v121_v55 }
  0xba   :  { %144 = vst.msk [vmem:[#allocation2 + $0x58] sm:$0xff] %vm135_vm0, %v127_v57  ;;  %v85_v58 = vpop.xlane.xlu1 %84 }
  0xbb   :  { %v123_v61 = vmul.f32 0.00390625, %v85_v58  ;;  %v82_v62 = vpop.xlane.xlu0 %81 }
  0xbc   :  { %v122_v63 = vmul.f32 0.00390625, %v82_v62 }
  0xbd   :  { %140 = vst.msk [vmem:[#allocation2 + $0x28] sm:$0xff] %vm135_vm0, %v123_v61  ;;  %v180_v7 = vld [vmem:[#allocation2 + $0xf] sm:$0xff]  ;;  %v179_v16 = vld [vmem:[#allocation2 + $0x7] sm:$0xff] }
  0xbe   :  { %139 = vst.msk [vmem:[#allocation2 + $0x20] sm:$0xff] %vm135_vm0, %v122_v63  ;;  %v91_v10 = vpop.xlane.xlu1 %90  ;;  %v238_v11 = vmul.f32 %v876_v60, %v180_v7  ;;  %v220_v46 = vsel %vm212_vm1, %v179_v16, 0.0  ;;  %v195_v49 = vld [vmem:[#allocation2 + $0x9] sm:$0xff]  ;;  %v165_v7 = vmul.f32 %v878_v3, %v121_v55 }
  0xbf   :  { %v125_v17 = vmul.f32 0.00390625, %v91_v10  ;;  %v88_v22 = vpop.xlane.xlu0 %87  ;;  %v237_v62 = vmul.f32 %v876_v60, %v220_v46  ;;  %v898_v10 = vmul.f32 %v878_v3, %v127_v57  ;;  %v903_v52 = vmul.f32 %v884_v28, %v195_v49 }
  0xc0   :  { %v181_v29 = vld [vmem:[#allocation2 + $0x17] sm:$0xff]  ;;  %v124_v34 = vmul.f32 0.00390625, %v88_v22  ;;  %v254_v48 = vadd.f32 %v238_v11, %v164_v23  ;;  %v167_v11 = vmul.f32 %v878_v3, %v123_v61 }
  0xc1   :  { %v196_v40 = vld [vmem:[#allocation2 + $0x11] sm:$0xff]  ;;  %142 = vst.msk [vmem:[#allocation2 + $0x38] sm:$0xff] %vm135_vm0, %v125_v17  ;;  %v239_v50 = vmul.f32 %v876_v60, %v181_v29  ;;  %v169_v8 = vmul.f32 %v878_v3, %v125_v17 }
  0xc2   :  { %v296_v41 = vmul.f32 %v884_v28, %v196_v40  ;;  %141 = vst.msk [vmem:[#allocation2 + $0x30] sm:$0xff] %vm135_vm0, %v124_v34  ;;  %v100_v47 = vpop.xlane.xlu1 %99  ;;  %v187_v29 = vld [vmem:[#allocation2 + $0x57] sm:$0xff]  ;;  %v166_v40 = vmul.f32 %v878_v3, %v122_v63  ;;  %v253_v63 = vadd.f32 %v237_v62, %v163_v54 }
  0xc3   :  { %v128_v51 = vmul.f32 0.00390625, %v100_v47  ;;  %v94_v53 = vpop.xlane.xlu0 %93  ;;  %v255_v47 = vadd.f32 %v239_v50, %v165_v7 }
  0xc4   :  { %v126_v56 = vmul.f32 0.00390625, %v94_v53  ;;  %v312_v58 = vadd.f32 %v296_v41, %v254_v48 }
  0xc5   :  { %v182_v16 = vld [vmem:[#allocation2 + $0x1f] sm:$0xff]  ;;  %145 = vst.msk [vmem:[#allocation2 + $0x60] sm:$0xff] %vm135_vm0, %v128_v51  ;;  %v183_v46 = vld [vmem:[#allocation2 + $0x27] sm:$0xff] }
  0xc6   :  { %v198_v22 = vld [vmem:[#allocation2 + $0x21] sm:$0xff]  ;;  %v197_v23 = vld [vmem:[#allocation2 + $0x19] sm:$0xff]  ;;  %v240_v41 = vmul.f32 %v876_v60, %v182_v16  ;;  %143 = vst.msk [vmem:[#allocation2 + $0x40] sm:$0xff] %vm135_vm0, %v126_v56  ;;  %v106_v55 = vpop.xlane.xlu1 %105  ;;  %v588_v57 = vmul.f32 -1.442695, %v312_v58  ;;  %v241_v45 = vmul.f32 %v876_v60, %v183_v46  ;;  %v228_v16 = vsel %vm212_vm1, %v187_v29, 0.0 }
  0xc7   :  { %v103_v61 = vpop.xlane.xlu0 %102  ;;  %v130_v48 = vmul.f32 0.00390625, %v106_v55  ;;  %v297_v53 = vmul.f32 %v884_v28, %v197_v23  ;;  %v298_v49 = vmul.f32 %v884_v28, %v198_v22  ;;  %v168_v23 = vmul.f32 %v878_v3, %v124_v34 }
  0xc8   :  { %v256_v44 = vadd.f32 %v240_v41, %v166_v40  ;;  %v129_v9 = vmul.f32 0.00390625, %v103_v61  ;;  %611 = vpow2.f32 %v588_v57  ;;  %v257_v41 = vadd.f32 %v241_v45, %v167_v11 }
  0xc9   :  { %v184_v43 = vld [vmem:[#allocation2 + $0x2f] sm:$0xff]  ;;  %147 = vst.msk [vmem:[#allocation2 + $0x70] sm:$0xff] %vm135_vm0, %v130_v48  ;;  %v313_v50 = vadd.f32 %v297_v53, %v255_v47  ;;  %v185_v59 = vld [vmem:[#allocation2 + $0x37] sm:$0xff] }
  0xca   :  { %v200_v58 = vld [vmem:[#allocation2 + $0x31] sm:$0xff]  ;;  %v199_v7 = vld [vmem:[#allocation2 + $0x29] sm:$0xff]  ;;  %v314_v55 = vadd.f32 %v298_v49, %v256_v44  ;;  %v242_v40 = vmul.f32 %v876_v60, %v184_v43  ;;  %146 = vst.msk [vmem:[#allocation2 + $0x68] sm:$0xff] %vm135_vm0, %v129_v9  ;;  %v112_v54 = vpop.xlane.xlu1 %111  ;;  %v170_v44 = vmul.f32 %v878_v3, %v126_v56  ;;  %v172_v43 = vmul.f32 %v878_v3, %v128_v51 }
  0xcb   :  { %v300_v22 = vmul.f32 %v884_v28, %v200_v58  ;;  %v109_v62 = vpop.xlane.xlu0 %108  ;;  %v132_v29 = vmul.f32 0.00390625, %v112_v54  ;;  %v589_v17 = vmul.f32 -1.442695, %v313_v50  ;;  %v299_v57 = vmul.f32 %v884_v28, %v199_v7 }
  0xcc   :  { %v590_v46 = vmul.f32 -1.442695, %v314_v55  ;;  %v258_v47 = vadd.f32 %v242_v40, %v168_v23  ;;  %v188_v61 = vld [vmem:[#allocation2 + $0x5f] sm:$0xff]  ;;  %v131_v34 = vmul.f32 0.00390625, %v109_v62  ;;  %v243_v54 = vmul.f32 %v876_v60, %v185_v59 }
  0xcd   :  { %v186_v53 = vld [vmem:[#allocation2 + $0x3f] sm:$0xff]  ;;  %149 = vst.msk [vmem:[#allocation2 + $0x80] sm:$0xff] %vm135_vm0, %v132_v29  ;;  %613 = vpow2.f32 %v589_v17  ;;  %v315_v58 = vadd.f32 %v299_v57, %v257_v41  ;;  %v246_v51 = vmul.f32 %v876_v60, %v188_v61  ;;  %v173_v23 = vmul.f32 %v878_v3, %v129_v9 }
  0xce   :  { %v202_v49 = vld [vmem:[#allocation2 + $0x41] sm:$0xff]  ;;  %615 = vpow2.f32 %v590_v46  ;;  %v316_v45 = vadd.f32 %v300_v22, %v258_v47  ;;  %v244_v11 = vmul.f32 %v876_v60, %v186_v53  ;;  %148 = vst.msk [vmem:[#allocation2 + $0x78] sm:$0xff] %vm135_vm0, %v131_v34  ;;  %v118_v56 = vpop.xlane.xlu1 %117  ;;  %v201_v7 = vld [vmem:[#allocation2 + $0x39] sm:$0xff]  ;;  %v933_v57 = vadd.f32 %v903_v52, %v253_v63 }
  0xcf   :  { %v285_v50 = vsel %vm277_vm2, %v202_v49, 0.0  ;;  %v115_v40 = vpop.xlane.xlu0 %114  ;;  %v134_v62 = vmul.f32 0.00390625, %v118_v56  ;;  %v591_v41 = vmul.f32 -1.442695, %v315_v58  ;;  %v936_v46 = vmul.f32 %v876_v60, %v228_v16 }
  0xd0   :  { %v302_v55 = vmul.f32 %v884_v28, %v285_v50  ;;  %v592_v59 = vmul.f32 -1.442695, %v316_v45  ;;  %v260_v17 = vadd.f32 %v244_v11, %v170_v44  ;;  %v930_v22 = vmul.f32 0.00390625, %v115_v40 }
  0xd1   :  { %v189_v47 = vld [vmem:[#allocation2 + $0x67] sm:$0xff]  ;;  %v174_v61 = vmul.f32 %v878_v3, %v130_v48  ;;  %v190_v53 = vld [vmem:[#allocation2 + $0x6f] sm:$0xff]  ;;  %151 = vst.msk [vmem:[#allocation2 + $0x90] sm:$0xff] %vm135_vm0, %v134_v62  ;;  %v301_v49 = vmul.f32 %v884_v28, %v201_v7  ;;  %v176_v58 = vmul.f32 %v878_v3, %v132_v29  ;;  %v259_v52 = vadd.f32 %v243_v54, %v169_v8 }
  0xd2   :  { %v204_v9 = vld [vmem:[#allocation2 + $0x61] sm:$0xff]  ;;  %v612_v45 = vpop.eup %611  ;;  %617 = vpow2.f32 %v592_v59  ;;  %v247_v44 = vmul.f32 %v876_v60, %v189_v47  ;;  %150 = vst.msk [vmem:[#allocation2 + $0x88] sm:$0xff] %vm135_vm0, %v930_v22  ;;  %v205_v63 = vld [vmem:[#allocation2 + $0x69] sm:$0xff]  ;;  %v318_v16 = vadd.f32 %v302_v55, %v260_v17  ;;  %v248_v48 = vmul.f32 %v876_v60, %v190_v53 }
  0xd3   :  { %v376_v11 = vadd.f32 1.0, %v612_v45  ;;  %619 = vpow2.f32 %v591_v41  ;;  %v262_v50 = vadd.f32 %v246_v51, %v172_v43  ;;  %v175_v7 = vmul.f32 %v878_v3, %v131_v34 }
  0xd4   :  { %v263_v56 = vadd.f32 %v247_v44, %v173_v23  ;;  %v304_v40 = vmul.f32 %v884_v28, %v204_v9  ;;  %v264_v59 = vadd.f32 %v248_v48, %v174_v61  ;;  %v317_v29 = vadd.f32 %v301_v49, %v259_v52  ;;  %v203_v48 = vld [vmem:[#allocation2 + $0x59] sm:$0xff] }
  0xd5   :  { %v191_v47 = vld [vmem:[#allocation2 + $0x77] sm:$0xff]  ;;  %v192_v42 = vld [vmem:[#allocation2 + $0x7f] sm:$0xff]  ;;  %621 = vrcp.f32 %v376_v11  ;;  %v305_v8 = vmul.f32 %v884_v28, %v205_v63  ;;  %v178_v17 = vmul.f32 %v878_v3, %v134_v62  ;;  %v594_v34 = vmul.f32 -1.442695, %v318_v16 }
  0xd6   :  { %v206_v39 = vld [vmem:[#allocation2 + $0x71] sm:$0xff]  ;;  %v249_v54 = vmul.f32 %v876_v60, %v191_v47  ;;  %v250_v55 = vmul.f32 %v876_v60, %v192_v42  ;;  %v320_v43 = vadd.f32 %v304_v40, %v262_v50  ;;  %v207_v51 = vld [vmem:[#allocation2 + $0x79] sm:$0xff]  ;;  %v593_v41 = vmul.f32 -1.442695, %v317_v29 }
  0xd7   :  { %v614_v23 = vpop.eup %613  ;;  %v306_v61 = vmul.f32 %v884_v28, %v206_v39  ;;  %v321_v53 = vadd.f32 %v305_v8, %v263_v56  ;;  %v307_v63 = vmul.f32 %v884_v28, %v207_v51  ;;  %v177_v35 = vmul.f32 %v878_v3, %v930_v22 }
  0xd8   :  { %v616_v9 = vpop.eup %615  ;;  %v265_v45 = vadd.f32 %v249_v54, %v175_v7  ;;  %v210_v49 = vld [vmem:[#allocation2 + $0x91] sm:$0xff]  ;;  %v377_v44 = vadd.f32 1.0, %v614_v23  ;;  %v596_v52 = vmul.f32 -1.442695, %v320_v43  ;;  %v266_v11 = vadd.f32 %v250_v55, %v176_v58 }
  0xd9   :  { %v194_v42 = vld [vmem:[#allocation2 + $0x8f] sm:$0xff]  ;;  %v293_v62 = vsel %vm277_vm2, %v210_v49, 0.0  ;;  %623 = vpow2.f32 %v593_v41  ;;  %v322_v50 = vadd.f32 %v306_v61, %v264_v59  ;;  %v208_v16 = vld [vmem:[#allocation2 + $0x81] sm:$0xff]  ;;  %v378_v40 = vadd.f32 1.0, %v616_v9 }
  0xda   :  { %v193_v47 = vld [vmem:[#allocation2 + $0x87] sm:$0xff]  ;;  %v252_v39 = vmul.f32 %v876_v60, %v194_v42  ;;  %v310_v56 = vmul.f32 %v884_v28, %v293_v62  ;;  %625 = vrcp.f32 %v377_v44  ;;  %v308_v29 = vmul.f32 %v884_v28, %v208_v16 }
  0xdb   :  { %627 = vpow2.f32 %v594_v34  ;;  %v598_v7 = vmul.f32 -1.442695, %v322_v50  ;;  %v303_v58 = vmul.f32 %v884_v28, %v203_v48  ;;  %v597_v59 = vmul.f32 -1.442695, %v321_v53  ;;  %v209_v9 = vld [vmem:[#allocation2 + $0x89] sm:$0xff] }
  0xdc   :  { %v618_v8 = vpop.eup %617  ;;  %v268_v54 = vadd.f32 %v252_v39, %v178_v17  ;;  %629 = vpow2.f32 %v596_v52  ;;  %v251_v43 = vmul.f32 %v876_v60, %v193_v47  ;;  %v324_v51 = vadd.f32 %v308_v29, %v266_v11 }
  0xdd   :  { %v620_v55 = vpop.eup %619  ;;  %631 = vpow2.f32 %v598_v7  ;;  %v323_v23 = vadd.f32 %v307_v63, %v265_v45  ;;  %v261_v34 = vadd.f32 %v936_v46, %v898_v10  ;;  %v587_v44 = vmul.f32 -1.442695, %v933_v57 }
  0xde   :  { %633 = vrcp.f32 %v378_v40  ;;  %v326_v41 = vadd.f32 %v310_v56, %v268_v54  ;;  %v379_v61 = vadd.f32 1.0, %v620_v55  ;;  %v600_v3 = vmul.f32 -1.442695, %v324_v51 }
  0xdf   :  { %v622_v49 = vpop.eup %621  ;;  %v380_v22 = vadd.f32 1.0, %v618_v8  ;;  %635 = vpow2.f32 %v597_v59  ;;  %v319_v17 = vadd.f32 %v303_v58, %v261_v34  ;;  %v267_v53 = vadd.f32 %v251_v43, %v177_v35 }
  0xe0   :  { %430 = vperm.xlu1 %609, %v622_v49   ;;  %637 = vpow2.f32 %v600_v3  ;;  %v599_v60 = vmul.f32 -1.442695, %v323_v23  ;;  %v309_v45 = vmul.f32 %v884_v28, %v209_v9  ;;  %v602_v52 = vmul.f32 -1.442695, %v326_v41 }
  0xe1   :  { %639 = vrcp.f32 %v379_v61  ;;  %v595_v63 = vmul.f32 -1.442695, %v319_v17 }
  0xe2   :  { %641 = vpow2.f32 %v587_v44  ;;  %v325_v57 = vadd.f32 %v309_v45, %v267_v53 }
  0xe3   :  { %v624_v10 = vpop.eup %623  ;;  %643 = vrcp.f32 %v380_v22 }
  0xe4   :  { %v626_v46 = vpop.eup %625  ;;  %645 = vpow2.f32 %v599_v60  ;;  %v381_v42 = vadd.f32 1.0, %v624_v10  ;;  %v601_v28 = vmul.f32 -1.442695, %v325_v57 }
  0xe5   :  { %v628_v48 = vpop.eup %627  ;;  %435 = vperm.xlu1 %609, %v626_v46   ;;  %647 = vpow2.f32 %v602_v52 }
  0xe6   :  { %v630_v11 = vpop.eup %629  ;;  %649 = vpow2.f32 %v595_v63  ;;  %v382_v39 = vadd.f32 1.0, %v628_v48 }
  0xe7   :  { %v632_v62 = vpop.eup %631  ;;  %v384_v50 = vadd.f32 1.0, %v630_v11 }
  0xe8   :  { %v634_v16 = vpop.eup %633  ;;  %v386_v40 = vadd.f32 1.0, %v632_v62 }
  0xe9   :  { %440 = vperm.xlu1 %609, %v634_v16   ;;  %651 = vrcp.f32 %v384_v50  ;;  %v636_v47 = vpop.eup %635 }
  0xea   :  { %653 = vrcp.f32 %v381_v42  ;;  %v638_v56 = vpop.eup %637  ;;  %v385_v35 = vadd.f32 1.0, %v636_v47 }
  0xeb   :  { %655 = vrcp.f32 %v386_v40  ;;  %v640_v7 = vpop.eup %639  ;;  %v388_v29 = vadd.f32 1.0, %v638_v56 }
  0xec   :  { %v642_v58 = vpop.eup %641  ;;  %657 = vpow2.f32 %v601_v28 }
  0xed   :  { %445 = vperm.xlu1 %609, %v640_v7   ;;  %v644_v8 = vpop.eup %643  ;;  %659 = vrcp.f32 %v382_v39  ;;  %v375_v55 = vadd.f32 1.0, %v642_v58 }
  0xee   :  { %v646_v54 = vpop.eup %645  ;;  %661 = vrcp.f32 %v388_v29 }
  0xef   :  { %v648_v59 = vpop.eup %647  ;;  %663 = vrcp.f32 %v385_v35  ;;  %v387_v51 = vadd.f32 1.0, %v646_v54 }
  0xf0   :  { %v650_v43 = vpop.eup %649  ;;  %v390_v34 = vadd.f32 1.0, %v648_v59  ;;  %665 = vrcp.f32 %v375_v55  ;;  %v1033_v55 = vld [vmem:[#allocation16_spill] sm:$0xff] }
  0xf1   :  { %450 = vperm.xlu1 %609, %v644_v8   ;;  %667 = vrcp.f32 %v387_v51  ;;  %v383_v9 = vadd.f32 1.0, %v650_v43 }
  0xf2   :  { %669 = vrcp.f32 %v390_v34 }
  0xf3   :  { %v652_v23 = vpop.eup %651  ;;  %671 = vrcp.f32 %v383_v9  ;;  %v1037_v9 = vld [vmem:[#allocation18_spill] sm:$0xff] }
  0xf4   :  { %v654_v41 = vpop.eup %653  ;;  %470 = vperm.xlu0 %610, %v652_v23   ;;  %v1034_v23 = vld [vmem:[#allocation12_spill] sm:$0xff] }
  0xf5   :  { %v656_v61 = vpop.eup %655  ;;  %455 = vperm.xlu1 %609, %v654_v41  }
  0xf6   :  { %v658_v49 = vpop.eup %657 }
  0xf7   :  { %v660_v44 = vpop.eup %659  ;;  %v389_v22 = vadd.f32 1.0, %v658_v49 }
  0xf8   :  { %480 = vperm.xlu0 %610, %v656_v61   ;;  %v662_v3 = vpop.eup %661 }
  0xf9   :  { %460 = vperm.xlu1 %609, %v660_v44   ;;  %v664_v17 = vpop.eup %663  ;;  %673 = vrcp.f32 %v389_v22 }
  0xfa   :  { %v666_v53 = vpop.eup %665 }
  0xfb   :  { %v668_v60 = vpop.eup %667 }
  0xfc   :  { %490 = vperm.xlu0 %610, %v662_v3   ;;  %v670_v45 = vpop.eup %669 }
  0xfd   :  { %475 = vperm.xlu1 %609, %v664_v17   ;;  %v672_v52 = vpop.eup %671 }
 0x100   :  { %425 = vperm.xlu0 %610, %v666_v53  }
 0x101   :  { %485 = vperm.xlu1 %609, %v668_v60  }
 0x103   :  { %v674_v10 = vpop.eup %673 }
 0x104   :  { %500 = vperm.xlu0 %610, %v670_v45  }
 0x105   :  { %465 = vperm.xlu1 %609, %v672_v52  }
 0x109   :  { %495 = vperm.xlu1 %609, %v674_v10  }
 0x15f   :  { %v431_v46 = vpop.permute.xlu1 %430 }
 0x160   :  { %v505_v63 = vmul.f32 %v431_v46, %v776_v0  ;;  %v506_v48 = vmul.f32 %v431_v46, %v778_v1 }
 0x162   :  { %537 = vst [vmem:[#allocation8 + $0x10] sm:$0xff] %v505_v63  ;;  %538 = vst [vmem:[#allocation8 + $0x18] sm:$0xff] %v506_v48 }
 0x164   :  { %v436_v57 = vpop.permute.xlu1 %435 }
 0x165   :  { %v507_v11 = vmul.f32 %v436_v57, %v786_v5  ;;  %v508_v42 = vmul.f32 %v436_v57, %v788_v6 }
 0x167   :  { %539 = vst [vmem:[#allocation8 + $0x20] sm:$0xff] %v507_v11  ;;  %540 = vst [vmem:[#allocation8 + $0x28] sm:$0xff] %v508_v42 }
 0x168   :  { %v441_v62 = vpop.permute.xlu1 %440 }
 0x169   :  { %v509_v50 = vmul.f32 %v441_v62, %v804_v14  ;;  %v510_v16 = vmul.f32 %v441_v62, %v806_v15 }
 0x16b   :  { %541 = vst [vmem:[#allocation8 + $0x30] sm:$0xff] %v509_v50  ;;  %542 = vst [vmem:[#allocation8 + $0x38] sm:$0xff] %v510_v16 }
 0x16c   :  { %v446_v40 = vpop.permute.xlu1 %445 }
 0x16d   :  { %v511_v0 = vmul.f32 %v446_v40, %v800_v12  ;;  %v512_v1 = vmul.f32 %v446_v40, %v802_v13 }
 0x16f   :  { %543 = vst [vmem:[#allocation8 + $0x40] sm:$0xff] %v511_v0  ;;  %544 = vst [vmem:[#allocation8 + $0x48] sm:$0xff] %v512_v1 }
 0x170   :  { %v451_v28 = vpop.permute.xlu1 %450 }
 0x171   :  { %v513_v5 = vmul.f32 %v451_v28, %v816_v20  ;;  %v514_v6 = vmul.f32 %v451_v28, %v818_v21 }
 0x173   :  { %545 = vst [vmem:[#allocation8 + $0x50] sm:$0xff] %v513_v5  ;;  %546 = vst [vmem:[#allocation8 + $0x58] sm:$0xff] %v514_v6  ;;  %v471_v47 = vpop.permute.xlu0 %470 }
 0x174   :  { %v521_v14 = vmul.f32 %v471_v47, %v824_v24  ;;  %v522_v15 = vmul.f32 %v471_v47, %v826_v25  ;;  %v456_v39 = vpop.permute.xlu1 %455 }
 0x175   :  { %v515_v56 = vmul.f32 %v456_v39, %v812_v18  ;;  %v516_v12 = vmul.f32 %v456_v39, %v814_v19 }
 0x176   :  { %553 = vst [vmem:[#allocation8 + $0x90] sm:$0xff] %v521_v14  ;;  %554 = vst [vmem:[#allocation8 + $0x98] sm:$0xff] %v522_v15 }
 0x177   :  { %547 = vst [vmem:[#allocation8 + $0x60] sm:$0xff] %v515_v56  ;;  %548 = vst [vmem:[#allocation8 + $0x68] sm:$0xff] %v516_v12  ;;  %v481_v13 = vpop.permute.xlu0 %480 }
 0x178   :  { %v525_v20 = vmul.f32 %v481_v13, %v836_v30  ;;  %v526_v21 = vmul.f32 %v481_v13, %v838_v31  ;;  %v461_v7 = vpop.permute.xlu1 %460 }
 0x179   :  { %v517_v29 = vmul.f32 %v461_v7, %v828_v26  ;;  %v518_v24 = vmul.f32 %v461_v7, %v830_v27 }
 0x17a   :  { %557 = vst [vmem:[#allocation8 + $0xb0] sm:$0xff] %v525_v20  ;;  %558 = vst [vmem:[#allocation8 + $0xb8] sm:$0xff] %v526_v21 }
 0x17b   :  { %549 = vst [vmem:[#allocation8 + $0x70] sm:$0xff] %v517_v29  ;;  %550 = vst [vmem:[#allocation8 + $0x78] sm:$0xff] %v518_v24  ;;  %v491_v18 = vpop.permute.xlu0 %490 }
 0x17c   :  { %v529_v19 = vmul.f32 %v491_v18, %v848_v36  ;;  %v530_v25 = vmul.f32 %v491_v18, %v850_v37  ;;  %v476_v58 = vpop.permute.xlu1 %475  ;;  %v1031_v36 = vld [vmem:[#allocation14_spill] sm:$0xff] }
 0x17d   :  { %v523_v8 = vmul.f32 %v476_v58, %v840_v32  ;;  %v524_v30 = vmul.f32 %v476_v58, %v842_v33  ;;  %v1032_v33 = vld [vmem:[#allocation15_spill] sm:$0xff] }
 0x17e   :  { %561 = vst [vmem:[#allocation8 + $0xd0] sm:$0xff] %v529_v19  ;;  %562 = vst [vmem:[#allocation8 + $0xd8] sm:$0xff] %v530_v25 }
 0x17f   :  { %555 = vst [vmem:[#allocation8 + $0xa0] sm:$0xff] %v523_v8  ;;  %556 = vst [vmem:[#allocation8 + $0xa8] sm:$0xff] %v524_v30  ;;  %v426_v26 = vpop.permute.xlu0 %425 }
 0x180   :  { %v503_v27 = vmul.f32 %v426_v26, %v780_v2  ;;  %v504_v31 = vmul.f32 %v426_v26, %v784_v4  ;;  %v486_v35 = vpop.permute.xlu1 %485  ;;  %v1035_v2 = vld [vmem:[#allocation13_spill] sm:$0xff] }
 0x181   :  { %v527_v54 = vmul.f32 %v486_v35, %v852_v38  ;;  %v528_v59 = vmul.f32 %v486_v35, %v1031_v36  ;;  %v1036_v38 = vld [vmem:[#allocation17_spill] sm:$0xff] }
 0x182   :  { %535 = vst [vmem:[#allocation8] sm:$0xff] %v503_v27  ;;  %536 = vst [vmem:[#allocation8 + $0x8] sm:$0xff] %v504_v31 }
 0x183   :  { %559 = vst [vmem:[#allocation8 + $0xc0] sm:$0xff] %v527_v54  ;;  %560 = vst [vmem:[#allocation8 + $0xc8] sm:$0xff] %v528_v59  ;;  %v501_v32 = vpop.permute.xlu0 %500 }
 0x184   :  { %v533_v37 = vmul.f32 %v501_v32, %v1032_v33  ;;  %v534_v43 = vmul.f32 %v501_v32, %v1033_v55  ;;  %v466_v51 = vpop.permute.xlu1 %465 }
 0x185   :  { %v519_v34 = vmul.f32 %v466_v51, %v1034_v23  ;;  %v520_v41 = vmul.f32 %v466_v51, %v1035_v2 }
 0x186   :  { %565 = vst [vmem:[#allocation8 + $0xf0] sm:$0xff] %v533_v37  ;;  %566 = vst [vmem:[#allocation8 + $0xf8] sm:$0xff] %v534_v43 }
 0x187   :  { %551 = vst [vmem:[#allocation8 + $0x80] sm:$0xff] %v519_v34  ;;  %552 = vst [vmem:[#allocation8 + $0x88] sm:$0xff] %v520_v41 }
 0x188   :  { %v496_v4 = vpop.permute.xlu1 %495 }
 0x189   :  { %v531_v61 = vmul.f32 %v496_v4, %v1036_v38  ;;  %v532_v49 = vmul.f32 %v496_v4, %v1037_v9 }
 0x18b   :  { %563 = vst [vmem:[#allocation8 + $0xe0] sm:$0xff] %v531_v61  ;;  %564 = vst [vmem:[#allocation8 + $0xe8] sm:$0xff] %v532_v49 }
 0x18c   :  { %720 = shalt.err (!%p717_p3)
}
 0x18d   :  { %s721_s6 = scalar_lea.hbm %s1016_s2, 4096 }
 0x18e   :  { %p722_p4 = scmp.ne.s32.totalorder %s1016_s2, %s721_s6  ;;  %p725_p5 = scmp.lt.u32.totalorder %s721_s6, %s1016_s2 }
 0x190   :  { %p727_p6 = pnand %p725_p5, %p722_p4 }
 0x192   :  { %730 = shalt.err (!%p727_p6)
}
 0x193   :  { %578 = dma.vmem_to_hbm [thread:$0]  %s573_s30, 4096, %s1016_s2, [#allocation5], %s738_s1, %s738_s1, %s739_s22  }
 0x194   :  { %735 = dma.done.wait [#allocation5], 4096  }
 0x195   :  { %736 = vsyncadd [#allocation5], 4294963200 }
 0x196   :  { %582 = vsyncpa [#allocation4], 1 }
 0x197   :  { %583 = vsyncpa [#allocation5], 1 }
 0x198   :  { %584 = vsyncpa [#allocation6], 1 }

</bundles_post_ra>
